<compile_context>
chip_gen: v6e
topology: v6e:2x2x1
jax: 0.10.0
libtpu: 0.0.40
codegen_flags: <defaults>
</compile_context>

<pallas_src>
import functools

import jax
import jax.numpy as jnp
from jax.experimental import pallas as pl
from jax.experimental.pallas import tpu as pltpu


def _round_up(x: int, m: int) -> int:
    return (x + m - 1) // m * m


def _soft_select_attention_kernel(q_ref, s_ref, o_ref, m_sc, l_sc, acc_sc,
                                  *, ts, n_s_valid, apply_mask):
    kv = pl.program_id(1)
    n_kv = pl.num_programs(1)

    @pl.when(kv == 0)
    def _init():
        m_sc[...] = jnp.full_like(m_sc, -jnp.inf)
        l_sc[...] = jnp.zeros_like(l_sc)
        acc_sc[...] = jnp.zeros_like(acc_sc)

    q = q_ref[...]                                   # [tq, H]  (input dtype)
    s = s_ref[...]                                   # [ts, H]  (input dtype)
    h = s.shape[1]

    # Fold 1/sqrt(H) into q: a [tq, H] multiply instead of a [tq, N_s] one.
    # Operands are kept in the input dtype so bf16 inputs hit the bf16 MXU path.
    q_scaled = q * jnp.asarray(float(h) ** -0.5, dtype=q.dtype)

    # score[i, j] = <q_i, s_j> * scale  -> [tq, ts] with f32 accumulation.
    score = jax.lax.dot_general(
        q_scaled, s,
        dimension_numbers=(((1,), (1,)), ((), ())),
        preferred_element_type=jnp.float32,
    )

    if apply_mask:
        # Mask zero-padded support rows so they vanish under the softmax.
        col = kv * ts + jax.lax.broadcasted_iota(jnp.int32, score.shape, 1)
        score = jnp.where(col < n_s_valid, score, -jnp.inf)

    # Online (flash-style) softmax over the support axis; stats stay f32.
    m_prev = m_sc[...]
    m_new = jnp.maximum(m_prev, score.max(axis=1, keepdims=True))
    alpha = jnp.exp(m_prev - m_new)
    p = jnp.exp(score - m_new)                       # [tq, ts] f32
    l_sc[...] = alpha * l_sc[...] + p.sum(axis=1, keepdims=True)
    acc_sc[...] = alpha * acc_sc[...] + jax.lax.dot_general(
        p.astype(s.dtype), s,
        dimension_numbers=(((1,), (0,)), ((), ())),
        preferred_element_type=jnp.float32,
    )
    m_sc[...] = m_new

    @pl.when(kv == n_kv - 1)
    def _finalize():
        # Normalize the [tq, H] output (not the [tq, N_s] probabilities);
        # the approx reciprocal runs on the otherwise-idle EUP slot.
        inv_l = pl.reciprocal(l_sc[...], approx=True)
        o_ref[...] = (acc_sc[...] * inv_l).astype(o_ref.dtype)


def soft_select_attention(support: jax.Array, query: jax.Array,
                          *, tq: int = 256, ts: int = 512) -> jax.Array:
    """support: [N_s, H], query: [N_q, H] -> center: [N_q, H]."""
    n_q, h = query.shape
    n_s, h_s = support.shape
    assert h == h_s, "hidden dims must match"

    # Tile sizes: clamp to the (padded) problem, keep sublane multiples of 8.
    tq = min(tq, _round_up(n_q, 8))
    ts = min(ts, _round_up(n_s, 8))
    n_q_pad = _round_up(n_q, tq)
    n_s_pad = _round_up(n_s, ts)

    q_p = query if n_q_pad == n_q else jnp.pad(query, ((0, n_q_pad - n_q), (0, 0)))
    s_p = support if n_s_pad == n_s else jnp.pad(support, ((0, n_s_pad - n_s), (0, 0)))

    grid = (n_q_pad // tq, n_s_pad // ts)

    kernel = functools.partial(
        _soft_select_attention_kernel,
        ts=ts, n_s_valid=n_s, apply_mask=(n_s_pad != n_s))

    # TODO(synk): with H < 128 (H=32 in the test) output stores are lane-masked;
    # for production sizes batch/pad H to a multiple of 128 or fuse upstream.
    out = pl.pallas_call(
        kernel,
        out_shape=jax.ShapeDtypeStruct((n_q_pad, h), query.dtype),
        grid_spec=pltpu.PrefetchScalarGridSpec(
            num_scalar_prefetch=0,
            grid=grid,
            in_specs=[
                pl.BlockSpec((tq, h), lambda i, j: (i, 0)),   # query tile
                pl.BlockSpec((ts, h), lambda i, j: (j, 0)),   # support tile (streamed)
            ],
            out_specs=pl.BlockSpec((tq, h), lambda i, j: (i, 0)),
            scratch_shapes=[
                pltpu.VMEM((tq, 1), jnp.float32),   # running max m
                pltpu.VMEM((tq, 1), jnp.float32),   # running sum l
                pltpu.VMEM((tq, h), jnp.float32),   # unnormalized accumulator
            ],
        ),
        compiler_params=pltpu.CompilerParams(
            # query axis shards across TensorCores (megacore / v7x 2-TC);
            # support axis is the sequential online-softmax reduction (kept last).
            dimension_semantics=("parallel", "arbitrary"),
            # Room for larger tq/ts tiles; still leaves headroom on v7x (64 MiB).
            vmem_limit_bytes=48 * 1024 * 1024,
        ),
    )(q_p, s_p)

    return out[:n_q] if n_q_pad != n_q else out


def _reference(support, query):
    # Pure-JAX reference mirroring the PyTorch forward.
    scale = support.shape[1] ** (-0.5)
    score = (query[:, None, :] * support[None, :, :]).sum(axis=2) * scale
    att = jax.nn.softmax(score, axis=1)
    return att @ support


if __name__ == "__main__":
    key = jax.random.PRNGKey(0)
    k1, k2, k3, k4 = jax.random.split(key, 4)

    # Case 1: small shapes implied by the module (N_s=8, N_q=8, H=32).
    n_support, n_query, hidden = 8, 8, 32
    support = jax.random.normal(k1, (n_support, hidden), dtype=jnp.float32)
    query = jax.random.normal(k2, (n_query, hidden), dtype=jnp.float32)
    out = jax.block_until_ready(soft_select_attention(support, query))
    ref = _reference(support, query)
    assert out.shape == (n_query, hidden)
    assert jnp.allclose(out, ref, atol=1e-2, rtol=1e-2), "mismatch vs reference (case 1)"

    # Case 2: ragged shapes exercising padding/masking and the multi-step
    # online-softmax + multi-tile query path (tiny tiles forced on purpose).
    n_support, n_query = 20, 12
    support2 = jax.random.normal(k3, (n_support, hidden), dtype=jnp.float32)
    query2 = jax.random.normal(k4, (n_query, hidden), dtype=jnp.float32)
    out2 = jax.block_until_ready(soft_select_attention(support2, query2, tq=8, ts=8))
    ref2 = _reference(support2, query2)
    assert out2.shape == (n_query, hidden)
    assert jnp.allclose(out2, ref2, atol=1e-2, rtol=1e-2), "mismatch vs reference (case 2)"

    print("KERNEL_OK")
</pallas_src>

<mosaic_0001>
module attributes {stable_mosaic.version = 11 : i64} {
  func.func @_soft_select_attention_kernel(%arg0: i32, %arg1: i32, %arg2: memref<8x32xf32, #tpu.memory_space<vmem>>, %arg3: memref<8x32xf32, #tpu.memory_space<vmem>>, %arg4: memref<8x32xf32, #tpu.memory_space<vmem>>, %arg5: memref<8x1xf32, #tpu.memory_space<vmem>>, %arg6: memref<8x1xf32, #tpu.memory_space<vmem>>, %arg7: memref<8x32xf32, #tpu.memory_space<vmem>>) attributes {dimension_semantics = [#tpu.dimension_semantics<parallel>, #tpu.dimension_semantics<arbitrary>], iteration_bounds = array<i64: 1, 1>, scalar_prefetch = 0 : i64, scratch_operands = 3 : i64, tpu.core_type = #tpu.core_type<tc>, window_params = [{transform_indices = @transform_0, window_bounds = array<i64: 8, 32>}, {transform_indices = @transform_1, window_bounds = array<i64: 8, 32>}, {transform_indices = @transform_2, window_bounds = array<i64: 8, 32>}]} {
    %c0_i32 = arith.constant 0 : i32
    %0 = arith.cmpi eq, %arg1, %c0_i32 : i32
    %1 = arith.extui %0 : i1 to i32
    %c0_i32_0 = arith.constant 0 : i32
    %2 = arith.cmpi ne, %1, %c0_i32_0 : i32
    scf.if %2 {
      %cst_22 = arith.constant 0xFF800000 : f32
      %33 = vector.broadcast %cst_22 : f32 to vector<8x1xf32>
      %c0_23 = arith.constant 0 : index
      %c0_24 = arith.constant 0 : index
      %34 = vector.load %arg5[%c0_23, %c0_24] : memref<8x1xf32, #tpu.memory_space<vmem>>, vector<8x1xf32>
      tpu.vector_store %arg5[%c0_23, %c0_24], %33 {strides = array<i32>} : memref<8x1xf32, #tpu.memory_space<vmem>>, vector<8x1xf32>,
      %cst_25 = arith.constant 0.000000e+00 : f32
      %35 = vector.broadcast %cst_25 : f32 to vector<8x1xf32>
      %c0_26 = arith.constant 0 : index
      %c0_27 = arith.constant 0 : index
      %36 = vector.load %arg6[%c0_26, %c0_27] : memref<8x1xf32, #tpu.memory_space<vmem>>, vector<8x1xf32>
      tpu.vector_store %arg6[%c0_26, %c0_27], %35 {strides = array<i32>} : memref<8x1xf32, #tpu.memory_space<vmem>>, vector<8x1xf32>,
      %cst_28 = arith.constant 0.000000e+00 : f32
      %37 = vector.broadcast %cst_28 : f32 to vector<8x32xf32>
      %c0_29 = arith.constant 0 : index
      %c0_30 = arith.constant 0 : index
      %38 = vector.load %arg7[%c0_29, %c0_30] : memref<8x32xf32, #tpu.memory_space<vmem>>, vector<8x32xf32>
      tpu.vector_store %arg7[%c0_29, %c0_30], %37 {strides = array<i32>} : memref<8x32xf32, #tpu.memory_space<vmem>>, vector<8x32xf32>,
    } else {
    }
    %c0 = arith.constant 0 : index
    %c0_1 = arith.constant 0 : index
    %3 = vector.load %arg2[%c0, %c0_1] : memref<8x32xf32, #tpu.memory_space<vmem>>, vector<8x32xf32>
    %c0_2 = arith.constant 0 : index
    %c0_3 = arith.constant 0 : index
    %4 = vector.load %arg3[%c0_2, %c0_3] : memref<8x32xf32, #tpu.memory_space<vmem>>, vector<8x32xf32>
    %cst = arith.constant 0.176776692 : f32
    %5 = vector.broadcast %cst : f32 to vector<8x32xf32>
    %6 = arith.mulf %3, %5 : vector<8x32xf32>
    %cst_4 = arith.constant dense<0.000000e+00> : vector<8x8xf32>
    %7 = tpu.matmul %6, %4, %cst_4 {dimension_numbers = #tpu.dot_dimension_numbers<[1], [1], [0], [0], [0, 0, 1, 0], [], []>} : vector<8x32xf32>, vector<8x32xf32>, vector<8x8xf32> -> vector<8x8xf32>
    %c0_5 = arith.constant 0 : index
    %c0_6 = arith.constant 0 : index
    %8 = vector.load %arg5[%c0_5, %c0_6] : memref<8x1xf32, #tpu.memory_space<vmem>>, vector<8x1xf32>
    %cst_7 = arith.constant dense<0xFF800000> : vector<8xf32>
    %9 = vector.multi_reduction <maximumf>, %7, %cst_7 [1] : vector<8x8xf32> to vector<8xf32>
    %10 = vector.shape_cast %9 : vector<8xf32> to vector<8x1xf32>
    %11 = arith.maximumf %8, %10 : vector<8x1xf32>
    %12 = arith.subf %8, %11 : vector<8x1xf32>
    %13 = math.exp %12 : vector<8x1xf32>
    %14 = vector.broadcast %11 : vector<8x1xf32> to vector<8x8xf32>
    %15 = arith.subf %7, %14 : vector<8x8xf32>
    %16 = math.exp %15 : vector<8x8xf32>
    %c0_8 = arith.constant 0 : index
    %c0_9 = arith.constant 0 : index
    %17 = vector.load %arg6[%c0_8, %c0_9] : memref<8x1xf32, #tpu.memory_space<vmem>>, vector<8x1xf32>
    %18 = arith.mulf %13, %17 : vector<8x1xf32>
    %cst_10 = arith.constant dense<0.000000e+00> : vector<8xf32>
    %19 = vector.multi_reduction <add>, %16, %cst_10 [1] : vector<8x8xf32> to vector<8xf32>
    %20 = vector.shape_cast %19 : vector<8xf32> to vector<8x1xf32>
    %21 = arith.addf %18, %20 : vector<8x1xf32>
    %c0_11 = arith.constant 0 : index
    %c0_12 = arith.constant 0 : index
    %22 = vector.load %arg6[%c0_11, %c0_12] : memref<8x1xf32, #tpu.memory_space<vmem>>, vector<8x1xf32>
    tpu.vector_store %arg6[%c0_11, %c0_12], %21 {strides = array<i32>} : memref<8x1xf32, #tpu.memory_space<vmem>>, vector<8x1xf32>,
    %c0_13 = arith.constant 0 : index
    %c0_14 = arith.constant 0 : index
    %23 = vector.load %arg7[%c0_13, %c0_14] : memref<8x32xf32, #tpu.memory_space<vmem>>, vector<8x32xf32>
    %24 = vector.broadcast %13 : vector<8x1xf32> to vector<8x32xf32>
    %25 = arith.mulf %24, %23 : vector<8x32xf32>
    %cst_15 = arith.constant dense<0.000000e+00> : vector<8x32xf32>
    %26 = tpu.matmul %16, %4, %cst_15 {dimension_numbers = #tpu.dot_dimension_numbers<[1], [0], [0], [1], [0, 0, 1, 1], [], []>} : vector<8x8xf32>, vector<8x32xf32>, vector<8x32xf32> -> vector<8x32xf32>
    %27 = arith.addf %25, %26 : vector<8x32xf32>
    %c0_16 = arith.constant 0 : index
    %c0_17 = arith.constant 0 : index
    %28 = vector.load %arg7[%c0_16, %c0_17] : memref<8x32xf32, #tpu.memory_space<vmem>>, vector<8x32xf32>
    tpu.vector_store %arg7[%c0_16, %c0_17], %27 {strides = array<i32>} : memref<8x32xf32, #tpu.memory_space<vmem>>, vector<8x32xf32>,
    %c0_18 = arith.constant 0 : index
    %c0_19 = arith.constant 0 : index
    %29 = vector.load %arg5[%c0_18, %c0_19] : memref<8x1xf32, #tpu.memory_space<vmem>>, vector<8x1xf32>
    tpu.vector_store %arg5[%c0_18, %c0_19], %11 {strides = array<i32>} : memref<8x1xf32, #tpu.memory_space<vmem>>, vector<8x1xf32>,
    %c0_i32_20 = arith.constant 0 : i32
    %30 = arith.cmpi eq, %arg1, %c0_i32_20 : i32
    %31 = arith.extui %30 : i1 to i32
    %c0_i32_21 = arith.constant 0 : i32
    %32 = arith.cmpi ne, %31, %c0_i32_21 : i32
    scf.if %32 {
      %c0_22 = arith.constant 0 : index
      %c0_23 = arith.constant 0 : index
      %33 = vector.load %arg6[%c0_22, %c0_23] : memref<8x1xf32, #tpu.memory_space<vmem>>, vector<8x1xf32>
      %34 = tpu.reciprocal %33 {approx = true} : vector<8x1xf32> -> vector<8x1xf32>
      %c0_24 = arith.constant 0 : index
      %c0_25 = arith.constant 0 : index
      %35 = vector.load %arg7[%c0_24, %c0_25] : memref<8x32xf32, #tpu.memory_space<vmem>>, vector<8x32xf32>
      %36 = vector.broadcast %34 : vector<8x1xf32> to vector<8x32xf32>
      %37 = arith.mulf %35, %36 : vector<8x32xf32>
      %c0_26 = arith.constant 0 : index
      %c0_27 = arith.constant 0 : index
      %38 = vector.load %arg4[%c0_26, %c0_27] : memref<8x32xf32, #tpu.memory_space<vmem>>, vector<8x32xf32>
      tpu.vector_store %arg4[%c0_26, %c0_27], %37 {strides = array<i32>} : memref<8x32xf32, #tpu.memory_space<vmem>>, vector<8x32xf32>,
    } else {
    }
    return
  }
  func.func @transform_0(%arg0: i32, %arg1: i32) -> (i32, i32) {
    %c0_i32 = arith.constant 0 : i32
    %c0_i32_0 = arith.constant 0 : i32
    return %arg0, %c0_i32 : i32, i32
  }
  func.func @transform_1(%arg0: i32, %arg1: i32) -> (i32, i32) {
    %c0_i32 = arith.constant 0 : i32
    %c0_i32_0 = arith.constant 0 : i32
    return %arg1, %c0_i32 : i32, i32
  }
  func.func @transform_2(%arg0: i32, %arg1: i32) -> (i32, i32) {
    %c0_i32 = arith.constant 0 : i32
    %c0_i32_0 = arith.constant 0 : i32
    return %arg0, %c0_i32 : i32, i32
  }
}

</mosaic_0001>

<bundles_post_ra>
// kernel: tpu_custom_call.1
= control target key start
LH: loop header
LB: loop body
LE: loop exit
PB: predicated region body
PF: predicated region fallthrough
CT: control target
= control target key end

     0   :  { %7 = vsyncpa [#allocation6], 0  ;;  %s403_s0 = inlined_call_operand.hbm [shape: f32[8,32], index: 0, kind: input, shape index: {}]   ;;  %s404_s1 = inlined_call_operand.hbm [shape: f32[8,32], index: 1, kind: input, shape index: {}]   ;;  %s405_s2 = inlined_call_operand.hbm [shape: f32[8,32], index: 2, kind: output, shape index: {}]  }
   0x1   :  { %8 = vsyncpa [#allocation9], 0 }
   0x2   :  { %9 = vsyncpa [#allocation7], 0  ;;  %s360_s9 = smov [#allocation5]   ;;  %s361_s11 = smov [#allocation8]  }
   0x3   :  { %s16_s10 = sshll.u32 %s360_s9, 4  ;;  %s26_s12 = sshll.u32 %s361_s11, 4  ;;  %s17_s10 = int_to_ptr.vmem [resolvable:$true] %s16_s10  ;;  %s27_s12 = int_to_ptr.vmem [resolvable:$true] %s26_s12 }
   0x4   :  { %s302_s13 = scalar_lea.vmem %s17_s10, 128  ;;  %p307_p1 = scmp.lt.s32.totalorder %s17_s10, %s17_s10 }
   0x5   :  { %p303_p0 = scmp.ne.s32.totalorder %s17_s10, %s302_s13  ;;  %p308_p2 = scmp.lt.s32.totalorder %s302_s13, %s302_s13 }
   0x7   :  { %p309_p3 = por %p308_p2, %p307_p1 }
   0x9   :  { %p310_p4 = pnand %p309_p3, %p303_p0 }
   0xb   :  { %313 = shalt.err (!%p310_p4)
}
   0xc   :  { %19 = dma.hbm_to_vmem [thread:$0]  %s403_s0, 128, %s17_s10, [#allocation6]  }
   0xd   :  { %s322_s16 = scalar_lea.vmem %s27_s12, 128  ;;  %p327_p6 = scmp.lt.s32.totalorder %s27_s12, %s27_s12 }
   0xe   :  { %p323_p5 = scmp.ne.s32.totalorder %s27_s12, %s322_s16  ;;  %p328_p7 = scmp.lt.s32.totalorder %s322_s16, %s322_s16 }
  0x10   :  { %p329_p8 = por %p328_p7, %p327_p6 }
  0x12   :  { %p330_p9 = pnand %p329_p8, %p323_p5 }
  0x14   :  { %333 = shalt.err (!%p330_p9)
}
  0x15   :  { %29 = dma.hbm_to_vmem [thread:$0]  %s404_s1, 128, %s27_s12, [#allocation9]  }
  0x16   :  { %354 = dma.done.wait [#allocation6], 128  }
  0x17   :  { %355 = vsyncadd [#allocation6], 4294967168 }
  0x18   :  { %356 = dma.done.wait [#allocation9], 128  }
  0x19   :  { %357 = vsyncadd [#allocation9], 4294967168  ;;  %vm43_vm0 = vcmask 261120   ;;  %v362_v0 = vmov 0.0   ;;  %vm363_vm1 = vmmov 0   ;;  %v46_v1 = vld [vmem:[#allocation8] sm:$0xff] }
  0x1a   :  { %269 = vmatprep.subr.mxu0 %v362_v0  ;;  %44 = vst.msk [vmem:[#allocation4] sm:$0xff] %vm43_vm0, %v362_v0  ;;  %271 = vmatprep.mubr.msk.f32.mxu0 %vm363_vm1, %v362_v0  ;;  %v45_v2 = vld [vmem:[#allocation5] sm:$0xff]  ;;  %vm40_vm2 = vcmask 7168   ;;  %v364_v4 = vmov -inf   ;;  %vm126_vm3 = vcmask 64512   ;;  %v365_v8 = vmov 0  }
  0x1b   :  { %274 = vmatprep.subr.mxu1 %v362_v0  ;;  %276 = vmatprep.mubr.msk.f32.mxu1 %vm363_vm1, %v362_v0  ;;  %v47_v3 = vmul.f32 0.17677669, %v45_v2  ;;  %41 = vst.msk [vmem:[#allocation2] sm:$0xff] %vm40_vm2, %v364_v4  ;;  %42 = vst.msk [vmem:[#allocation3] sm:$0xff] %vm40_vm2, %v362_v0  ;;  %s366_s0 = smov [#allocation10]  }
  0x1c   :  { %270 = vmatpush3.xpose.msk.msra.mxu0 %vm43_vm0, %v46_v1  ;;  %275 = vmatpush3.msra.mxu1 %v46_v1  ;;  %s252_s1 = sshll.u32 %s366_s0, 4  ;;  %s253_s1 = int_to_ptr.vmem [resolvable:$true] %s252_s1 }
  0x1d   :  { %286 = vset.pattern.permute.xlu0 %v365_v8  ;;  %287 = vset.pattern.permute.xlu1 %v365_v8  ;;  %s334_s19 = scalar_lea.vmem %s253_s1, 128  ;;  %p339_p11 = scmp.lt.s32.totalorder %s253_s1, %s253_s1 }
  0x1e   :  { %p335_p10 = scmp.ne.s32.totalorder %s253_s1, %s334_s19  ;;  %p340_p12 = scmp.lt.s32.totalorder %s334_s19, %s334_s19 }
  0x1f   :  { %272 = vmatmul.mubr.msk.f32.vlgmr.msra.gmra.mxu0 %vm43_vm0, %v47_v3 }
  0x20   :  { %p341_p13 = por %p340_p12, %p339_p11 }
  0x21   :  { %v150_v26 = vld [vmem:[#allocation4] sm:$0xff] }
  0x22   :  { %v125_v9 = vld [vmem:[#allocation2] sm:$0xff]  ;;  %v142_v20 = vld [vmem:[#allocation3] sm:$0xff]  ;;  %p342_p0 = pnand %p341_p13, %p335_p10 }
  0xdf   :  { %v121_v5 = vpop.f32.mrf.mxu0 }
  0xe0   :  { %v127_v6 = vsel %vm126_vm3, %v121_v5, -inf }
  0xe1   :  { %128 = vmax.xlane.f32.xlu0 %v127_v6  ;;  %v273_v7 = vpop.f32.mrf.mxu0 }
 0x16a   :  { %v129_v10 = vpop.xlane.xlu0 %128 }
 0x16b   :  { %v130_v11 = vmax.f32 %v125_v9, %v129_v10 }
 0x16d   :  { %v131_v12 = vsub.f32 %v125_v9, %v130_v11  ;;  %232 = vst.msk [vmem:[#allocation2] sm:$0xff] %vm40_vm2, %v130_v11  ;;  %136 = vperm.xlu0 %286, %v130_v11  }
 0x16f   :  { %v132_v17 = vmul.f32 1.442695, %v131_v12 }
 0x1e8   :  { %v137_v13 = vpop.permute.xlu0 %136 }
 0x1e9   :  { %v139_v14 = vsub.f32 %v121_v5, %v137_v13 }
 0x1eb   :  { %v140_v15 = vmul.f32 1.442695, %v139_v14 }
 0x1ed   :  { %288 = vpow2.f32 %v140_v15 }
 0x1ee   :  { %290 = vpow2.f32 %v132_v17 }
 0x1fa   :  { %v289_v16 = vpop.eup %288 }
 0x1fb   :  { %277 = vmatmul.mubr.msk.f32.vlgmr.msra.gmra.mxu1 %vm126_vm3, %v289_v16  ;;  %v144_v18 = vsel %vm126_vm3, %v289_v16, 0.0  ;;  %v291_v19 = vpop.eup %290 }
 0x1fc   :  { %145 = vadd.xlane.f32.xlu1 %v144_v18  ;;  %v143_v21 = vmul.f32 %v291_v19, %v142_v20 }
 0x20d   :  { %153 = vperm.xlu1 %287, %v291_v19  }
 0x285   :  { %v146_v22 = vpop.xlane.xlu1 %145 }
 0x286   :  { %v147_v23 = vadd.f32 %v146_v22, %v143_v21 }
 0x288   :  { %149 = vst.msk [vmem:[#allocation3] sm:$0xff] %vm40_vm2, %v147_v23 }
 0x289   :  { %v154_v27 = vpop.permute.xlu1 %153 }
 0x28a   :  { %v156_v28 = vmul.f32 %v154_v27, %v150_v26 }
 0x28f   :  { %v236_v24 = vld [vmem:[#allocation3] sm:$0xff] }
 0x290   :  { %292 = vrcp.f32 %v236_v24 }
 0x29d   :  { %v293_v25 = vpop.eup %292 }
 0x29e   :  { %241 = vperm.xlu1 %287, %v293_v25  }
 0x2bb   :  { %v226_v29 = vpop.f32.mrf.mxu1 }
 0x2bc   :  { %v230_v30 = vadd.f32 %v226_v29, %v156_v28 }
 0x2bd   :  { %v278_v31 = vpop.f32.mrf.mxu1 }
 0x2be   :  { %231 = vst.msk [vmem:[#allocation4] sm:$0xff] %vm43_vm0, %v230_v30 }
 0x2c5   :  { %v238_v32 = vld [vmem:[#allocation4] sm:$0xff] }
 0x319   :  { %v242_v33 = vpop.permute.xlu1 %241 }
 0x31a   :  { %v244_v34 = vmul.f32 %v242_v33, %v238_v32 }
 0x31c   :  { %245 = vst.msk [vmem:[#allocation10] sm:$0xff] %vm43_vm0, %v244_v34 }
 0x31d   :  { %345 = shalt.err (!%p342_p0)
}
 0x31e   :  { %255 = dma.vmem_to_hbm [thread:$0]  %s253_s1, 128, %s405_s2, [#allocation7]  }
 0x31f   :  { %358 = dma.done.wait [#allocation7], 128  }
 0x320   :  { %359 = vsyncadd [#allocation7], 4294967168 }
 0x321   :  { %259 = vsyncpa [#allocation6], 1 }
 0x322   :  { %260 = vsyncpa [#allocation9], 1 }
 0x323   :  { %261 = vsyncpa [#allocation7], 1 }

</bundles_post_ra>
